<compile_context>
chip_gen: v7x
topology: tpu7x:2x2x1
jax: 0.10.0
libtpu: 0.0.40
codegen_flags: <defaults>
</compile_context>

<pallas_src>
import functools

import jax
import jax.numpy as jnp
from jax.experimental import pallas as pl
from jax.experimental.pallas import tpu as pltpu

F = 28 * 28  # 784
_DIMS = [(F, 128), (128, 64), (64, 32), (32, 64), (64, 128), (128, F)]


def _autoencoder_kernel(
    x_ref,                      # (TB, 784)  f32
    w1_ref, b1_ref,             # (784, 128) bf16, (1, 128) f32
    w2_ref, b2_ref,             # (128, 64)  bf16, (1, 64)  f32
    w3_ref, b3_ref,             # (64, 32)   bf16, (1, 32)  f32
    w4_ref, b4_ref,             # (32, 64)   bf16, (1, 64)  f32
    w5_ref, b5_ref,             # (64, 128)  bf16, (1, 128) f32
    w6_ref, b6_ref,             # (128, 784) bf16, (1, 784) f32
    out_ref,                    # (TB, 784)  f32
    *, bf16_sigmoid: bool,
):
    # Cast to bf16 in-kernel: the HBM read stays raw f32 / 784-wide.
    x = x_ref[...].astype(jnp.bfloat16)

    # --- encoder ---
    h = jnp.dot(x, w1_ref[...], preferred_element_type=jnp.float32) + b1_ref[...]
    h = jnp.maximum(h, 0.0).astype(jnp.bfloat16)
    h = jnp.dot(h, w2_ref[...], preferred_element_type=jnp.float32) + b2_ref[...]
    h = jnp.maximum(h, 0.0).astype(jnp.bfloat16)
    z = jnp.dot(h, w3_ref[...], preferred_element_type=jnp.float32) + b3_ref[...]
    z = z.astype(jnp.bfloat16)

    # --- decoder ---
    h = jnp.dot(z, w4_ref[...], preferred_element_type=jnp.float32) + b4_ref[...]
    h = jnp.maximum(h, 0.0).astype(jnp.bfloat16)
    h = jnp.dot(h, w5_ref[...], preferred_element_type=jnp.float32) + b5_ref[...]
    h = jnp.maximum(h, 0.0).astype(jnp.bfloat16)
    y = jnp.dot(h, w6_ref[...], preferred_element_type=jnp.float32) + b6_ref[...]

    if bf16_sigmoid:
        # v6e/v7x: bf16-capable EUP — halves exp/recip work and vreg footprint.
        out_ref[...] = jax.nn.sigmoid(y.astype(jnp.bfloat16)).astype(jnp.float32)
    else:
        # v5e and older: no bf16 EUP/VPU path — keep f32 sigmoid.
        out_ref[...] = jax.nn.sigmoid(y)


def _init_linear(key, fan_in, fan_out):
    """PyTorch nn.Linear default init; weight stored as (in, out)."""
    kw, kb = jax.random.split(key)
    bound = 1.0 / jnp.sqrt(float(fan_in))
    w = jax.random.uniform(kw, (fan_in, fan_out), jnp.float32, -bound, bound)
    b = jax.random.uniform(kb, (1, fan_out), jnp.float32, -bound, bound)
    return w, b


def make_autoencoder_params(key):
    keys = jax.random.split(key, len(_DIMS))
    params = []
    for k, (fi, fo) in zip(keys, _DIMS):
        params.extend(_init_linear(k, fi, fo))
    return tuple(params)   # (w1, b1, ..., w6, b6) in f32, weights as (in, out)


def _round_up(v, m):
    return (v + m - 1) // m * m


def _prepare_kernel_params(params):
    """Cast weights to bf16 (MXU dtype); keep biases f32. No padding."""
    out = []
    for i in range(6):
        out.append(params[2 * i].astype(jnp.bfloat16))
        out.append(params[2 * i + 1].astype(jnp.float32))
    return tuple(out)


def _bf16_sigmoid_ok():
    """bf16 EUP exists on v6e/v7x; keep f32 sigmoid on v5e and older."""
    try:
        kind = jax.devices()[0].device_kind.lower()
    except Exception:
        return False
    return not any(tag in kind for tag in ("v2", "v3", "v4", "v5"))


@functools.partial(jax.jit, static_argnames=("block_b", "bf16_sigmoid"))
def _autoencoder_forward_impl(x_nchw, params, *, block_b, bf16_sigmoid):
    B = x_nchw.shape[0]

    # Batch tile: multiple of 16 (fully-packed bf16 intermediates), capped by
    # block_b; split into >= 2 blocks when possible so both v7x cores are used.
    B16 = _round_up(B, 16)
    TB = min(block_b, B16)
    if B16 >= 32:
        TB = min(TB, _round_up((B16 + 1) // 2, 16))
    B_pad = _round_up(B, TB)
    n_blocks = B_pad // TB

    # nn.Flatten; keep raw f32 784-wide (no column pad / dtype pre-pass).
    x_flat = x_nchw.reshape(B, F)
    if B_pad != B:
        x_flat = jnp.pad(x_flat, ((0, B_pad - B), (0, 0)))

    kparams = _prepare_kernel_params(params)

    x_spec = pl.BlockSpec((TB, F), lambda i: (i, 0))
    out_spec = pl.BlockSpec((TB, F), lambda i: (i, 0))
    param_specs = [pl.BlockSpec(p.shape, lambda i: (0, 0)) for p in kparams]

    # Advisory cost estimate for the XLA scheduler.
    flops_per_row = 2 * sum(fi * fo for fi, fo in _DIMS)
    weight_bytes = sum(int(p.size) * p.dtype.itemsize for p in kparams)
    cost = pl.CostEstimate(
        flops=B_pad * flops_per_row,
        transcendentals=B_pad * F,
        bytes_accessed=B_pad * F * (4 + 4) + weight_bytes,
    )

    kernel = functools.partial(_autoencoder_kernel, bf16_sigmoid=bf16_sigmoid)

    out_pad = pl.pallas_call(
        kernel,
        out_shape=jax.ShapeDtypeStruct((B_pad, F), jnp.float32),
        grid=(n_blocks,),
        in_specs=[x_spec] + param_specs,
        out_specs=out_spec,
        compiler_params=pltpu.CompilerParams(
            dimension_semantics=("parallel",),
            vmem_limit_bytes=32 * 1024 * 1024,   # safe on v5e's smaller default
        ),
        cost_estimate=cost,
    )(x_flat, *kparams)

    # Drop batch padding only if it was added; nn.Unflatten(1, (1, 28, 28)).
    out = out_pad[:B] if B_pad != B else out_pad
    return out.reshape(B, 1, 28, 28)


def autoencoder_forward(x_nchw, params, *, block_b=512):
    """x_nchw: (B, 1, 28, 28) float32 -> (B, 1, 28, 28) float32."""
    return _autoencoder_forward_impl(
        x_nchw, params, block_b=block_b, bf16_sigmoid=_bf16_sigmoid_ok())


if __name__ == "__main__":
    key = jax.random.PRNGKey(0)
    k_params, k_x = jax.random.split(key)

    params = make_autoencoder_params(k_params)
    x = jax.random.uniform(k_x, (2, 1, 28, 28), jnp.float32)   # small MNIST-like batch

    y = autoencoder_forward(x, params)
    jax.block_until_ready(y)

    assert y.shape == (2, 1, 28, 28)
    assert y.dtype == jnp.float32
    # sigmoid output must be in (0, 1)
    assert bool(jnp.all((y > 0.0) & (y < 1.0)))

    print("KERNEL_OK")
</pallas_src>

<mosaic_0001>
module attributes {stable_mosaic.version = 11 : i64} {
  func.func @_autoencoder_kernel(%arg0: i32, %arg1: memref<16x784xf32, #tpu.memory_space<vmem>>, %arg2: memref<784x128xbf16, #tpu.memory_space<vmem>>, %arg3: memref<1x128xf32, #tpu.memory_space<vmem>>, %arg4: memref<128x64xbf16, #tpu.memory_space<vmem>>, %arg5: memref<1x64xf32, #tpu.memory_space<vmem>>, %arg6: memref<64x32xbf16, #tpu.memory_space<vmem>>, %arg7: memref<1x32xf32, #tpu.memory_space<vmem>>, %arg8: memref<32x64xbf16, #tpu.memory_space<vmem>>, %arg9: memref<1x64xf32, #tpu.memory_space<vmem>>, %arg10: memref<64x128xbf16, #tpu.memory_space<vmem>>, %arg11: memref<1x128xf32, #tpu.memory_space<vmem>>, %arg12: memref<128x784xbf16, #tpu.memory_space<vmem>>, %arg13: memref<1x784xf32, #tpu.memory_space<vmem>>, %arg14: memref<16x784xf32, #tpu.memory_space<vmem>>) attributes {dimension_semantics = [#tpu.dimension_semantics<parallel>], iteration_bounds = array<i64: 1>, scalar_prefetch = 0 : i64, scratch_operands = 0 : i64, tpu.core_type = #tpu.core_type<tc>, window_params = [{transform_indices = @transform_0, window_bounds = array<i64: 16, 784>}, {pipeline_mode = #tpu.pipeline_mode<synchronous>, transform_indices = @transform_1, window_bounds = array<i64: 784, 128>}, {pipeline_mode = #tpu.pipeline_mode<synchronous>, transform_indices = @transform_2, window_bounds = array<i64: 1, 128>}, {pipeline_mode = #tpu.pipeline_mode<synchronous>, transform_indices = @transform_3, window_bounds = array<i64: 128, 64>}, {pipeline_mode = #tpu.pipeline_mode<synchronous>, transform_indices = @transform_4, window_bounds = array<i64: 1, 64>}, {pipeline_mode = #tpu.pipeline_mode<synchronous>, transform_indices = @transform_5, window_bounds = array<i64: 64, 32>}, {pipeline_mode = #tpu.pipeline_mode<synchronous>, transform_indices = @transform_6, window_bounds = array<i64: 1, 32>}, {pipeline_mode = #tpu.pipeline_mode<synchronous>, transform_indices = @transform_7, window_bounds = array<i64: 32, 64>}, {pipeline_mode = #tpu.pipeline_mode<synchronous>, transform_indices = @transform_8, window_bounds = array<i64: 1, 64>}, {pipeline_mode = #tpu.pipeline_mode<synchronous>, transform_indices = @transform_9, window_bounds = array<i64: 64, 128>}, {pipeline_mode = #tpu.pipeline_mode<synchronous>, transform_indices = @transform_10, window_bounds = array<i64: 1, 128>}, {pipeline_mode = #tpu.pipeline_mode<synchronous>, transform_indices = @transform_11, window_bounds = array<i64: 128, 784>}, {pipeline_mode = #tpu.pipeline_mode<synchronous>, transform_indices = @transform_12, window_bounds = array<i64: 1, 784>}, {transform_indices = @transform_13, window_bounds = array<i64: 16, 784>}]} {
    %c0 = arith.constant 0 : index
    %c0_0 = arith.constant 0 : index
    %0 = vector.load %arg1[%c0, %c0_0] : memref<16x784xf32, #tpu.memory_space<vmem>>, vector<16x784xf32>
    %1 = arith.truncf %0 : vector<16x784xf32> to vector<16x784xbf16>
    %c0_1 = arith.constant 0 : index
    %c0_2 = arith.constant 0 : index
    %2 = vector.load %arg2[%c0_1, %c0_2] : memref<784x128xbf16, #tpu.memory_space<vmem>>, vector<784x128xbf16>
    %cst = arith.constant dense<0.000000e+00> : vector<16x128xf32>
    %3 = tpu.matmul %1, %2, %cst {dimension_numbers = #tpu.dot_dimension_numbers<[1], [0], [0], [1], [0, 0, 1, 1], [], []>} : vector<16x784xbf16>, vector<784x128xbf16>, vector<16x128xf32> -> vector<16x128xf32>
    %c0_3 = arith.constant 0 : index
    %c0_4 = arith.constant 0 : index
    %4 = vector.load %arg3[%c0_3, %c0_4] : memref<1x128xf32, #tpu.memory_space<vmem>>, vector<1x128xf32>
    %5 = vector.broadcast %4 : vector<1x128xf32> to vector<16x128xf32>
    %6 = arith.addf %3, %5 : vector<16x128xf32>
    %cst_5 = arith.constant 0.000000e+00 : f32
    %7 = vector.broadcast %cst_5 : f32 to vector<16x128xf32>
    %8 = arith.maximumf %6, %7 : vector<16x128xf32>
    %9 = arith.truncf %8 : vector<16x128xf32> to vector<16x128xbf16>
    %c0_6 = arith.constant 0 : index
    %c0_7 = arith.constant 0 : index
    %10 = vector.load %arg4[%c0_6, %c0_7] : memref<128x64xbf16, #tpu.memory_space<vmem>>, vector<128x64xbf16>
    %cst_8 = arith.constant dense<0.000000e+00> : vector<16x64xf32>
    %11 = tpu.matmul %9, %10, %cst_8 {dimension_numbers = #tpu.dot_dimension_numbers<[1], [0], [0], [1], [0, 0, 1, 1], [], []>} : vector<16x128xbf16>, vector<128x64xbf16>, vector<16x64xf32> -> vector<16x64xf32>
    %c0_9 = arith.constant 0 : index
    %c0_10 = arith.constant 0 : index
    %12 = vector.load %arg5[%c0_9, %c0_10] : memref<1x64xf32, #tpu.memory_space<vmem>>, vector<1x64xf32>
    %13 = vector.broadcast %12 : vector<1x64xf32> to vector<16x64xf32>
    %14 = arith.addf %11, %13 : vector<16x64xf32>
    %cst_11 = arith.constant 0.000000e+00 : f32
    %15 = vector.broadcast %cst_11 : f32 to vector<16x64xf32>
    %16 = arith.maximumf %14, %15 : vector<16x64xf32>
    %17 = arith.truncf %16 : vector<16x64xf32> to vector<16x64xbf16>
    %c0_12 = arith.constant 0 : index
    %c0_13 = arith.constant 0 : index
    %18 = vector.load %arg6[%c0_12, %c0_13] : memref<64x32xbf16, #tpu.memory_space<vmem>>, vector<64x32xbf16>
    %cst_14 = arith.constant dense<0.000000e+00> : vector<16x32xf32>
    %19 = tpu.matmul %17, %18, %cst_14 {dimension_numbers = #tpu.dot_dimension_numbers<[1], [0], [0], [1], [0, 0, 1, 1], [], []>} : vector<16x64xbf16>, vector<64x32xbf16>, vector<16x32xf32> -> vector<16x32xf32>
    %c0_15 = arith.constant 0 : index
    %c0_16 = arith.constant 0 : index
    %20 = vector.load %arg7[%c0_15, %c0_16] : memref<1x32xf32, #tpu.memory_space<vmem>>, vector<1x32xf32>
    %21 = vector.broadcast %20 : vector<1x32xf32> to vector<16x32xf32>
    %22 = arith.addf %19, %21 : vector<16x32xf32>
    %23 = arith.truncf %22 : vector<16x32xf32> to vector<16x32xbf16>
    %c0_17 = arith.constant 0 : index
    %c0_18 = arith.constant 0 : index
    %24 = vector.load %arg8[%c0_17, %c0_18] : memref<32x64xbf16, #tpu.memory_space<vmem>>, vector<32x64xbf16>
    %cst_19 = arith.constant dense<0.000000e+00> : vector<16x64xf32>
    %25 = tpu.matmul %23, %24, %cst_19 {dimension_numbers = #tpu.dot_dimension_numbers<[1], [0], [0], [1], [0, 0, 1, 1], [], []>} : vector<16x32xbf16>, vector<32x64xbf16>, vector<16x64xf32> -> vector<16x64xf32>
    %c0_20 = arith.constant 0 : index
    %c0_21 = arith.constant 0 : index
    %26 = vector.load %arg9[%c0_20, %c0_21] : memref<1x64xf32, #tpu.memory_space<vmem>>, vector<1x64xf32>
    %27 = vector.broadcast %26 : vector<1x64xf32> to vector<16x64xf32>
    %28 = arith.addf %25, %27 : vector<16x64xf32>
    %cst_22 = arith.constant 0.000000e+00 : f32
    %29 = vector.broadcast %cst_22 : f32 to vector<16x64xf32>
    %30 = arith.maximumf %28, %29 : vector<16x64xf32>
    %31 = arith.truncf %30 : vector<16x64xf32> to vector<16x64xbf16>
    %c0_23 = arith.constant 0 : index
    %c0_24 = arith.constant 0 : index
    %32 = vector.load %arg10[%c0_23, %c0_24] : memref<64x128xbf16, #tpu.memory_space<vmem>>, vector<64x128xbf16>
    %cst_25 = arith.constant dense<0.000000e+00> : vector<16x128xf32>
    %33 = tpu.matmul %31, %32, %cst_25 {dimension_numbers = #tpu.dot_dimension_numbers<[1], [0], [0], [1], [0, 0, 1, 1], [], []>} : vector<16x64xbf16>, vector<64x128xbf16>, vector<16x128xf32> -> vector<16x128xf32>
    %c0_26 = arith.constant 0 : index
    %c0_27 = arith.constant 0 : index
    %34 = vector.load %arg11[%c0_26, %c0_27] : memref<1x128xf32, #tpu.memory_space<vmem>>, vector<1x128xf32>
    %35 = vector.broadcast %34 : vector<1x128xf32> to vector<16x128xf32>
    %36 = arith.addf %33, %35 : vector<16x128xf32>
    %cst_28 = arith.constant 0.000000e+00 : f32
    %37 = vector.broadcast %cst_28 : f32 to vector<16x128xf32>
    %38 = arith.maximumf %36, %37 : vector<16x128xf32>
    %39 = arith.truncf %38 : vector<16x128xf32> to vector<16x128xbf16>
    %c0_29 = arith.constant 0 : index
    %c0_30 = arith.constant 0 : index
    %40 = vector.load %arg12[%c0_29, %c0_30] : memref<128x784xbf16, #tpu.memory_space<vmem>>, vector<128x784xbf16>
    %cst_31 = arith.constant dense<0.000000e+00> : vector<16x784xf32>
    %41 = tpu.matmul %39, %40, %cst_31 {dimension_numbers = #tpu.dot_dimension_numbers<[1], [0], [0], [1], [0, 0, 1, 1], [], []>} : vector<16x128xbf16>, vector<128x784xbf16>, vector<16x784xf32> -> vector<16x784xf32>
    %c0_32 = arith.constant 0 : index
    %c0_33 = arith.constant 0 : index
    %42 = vector.load %arg13[%c0_32, %c0_33] : memref<1x784xf32, #tpu.memory_space<vmem>>, vector<1x784xf32>
    %43 = vector.broadcast %42 : vector<1x784xf32> to vector<16x784xf32>
    %44 = arith.addf %41, %43 : vector<16x784xf32>
    %45 = arith.truncf %44 : vector<16x784xf32> to vector<16x784xbf16>
    %46 = arith.negf %45 : vector<16x784xbf16>
    %47 = math.exp %46 : vector<16x784xbf16>
    %cst_34 = arith.constant 1.000000e+00 : bf16
    %48 = vector.broadcast %cst_34 : bf16 to vector<16x784xbf16>
    %49 = arith.addf %48, %47 : vector<16x784xbf16>
    %50 = arith.divf %48, %49 : vector<16x784xbf16>
    %51 = arith.extf %50 : vector<16x784xbf16> to vector<16x784xf32>
    %c0_35 = arith.constant 0 : index
    %c0_36 = arith.constant 0 : index
    %52 = vector.load %arg14[%c0_35, %c0_36] : memref<16x784xf32, #tpu.memory_space<vmem>>, vector<16x784xf32>
    tpu.vector_store %arg14[%c0_35, %c0_36], %51 {strides = array<i32>} : memref<16x784xf32, #tpu.memory_space<vmem>>, vector<16x784xf32>,
    return
  }
  func.func @transform_0(%arg0: i32) -> (i32, i32) {
    %c0_i32 = arith.constant 0 : i32
    %c0_i32_0 = arith.constant 0 : i32
    return %arg0, %c0_i32 : i32, i32
  }
  func.func @transform_1(%arg0: i32) -> (i32, i32) {
    %c0_i32 = arith.constant 0 : i32
    %c0_i32_0 = arith.constant 0 : i32
    %c0_i32_1 = arith.constant 0 : i32
    return %c0_i32, %c0_i32_0 : i32, i32
  }
  func.func @transform_2(%arg0: i32) -> (i32, i32) {
    %c0_i32 = arith.constant 0 : i32
    %c0_i32_0 = arith.constant 0 : i32
    %c0_i32_1 = arith.constant 0 : i32
    return %c0_i32, %c0_i32_0 : i32, i32
  }
  func.func @transform_3(%arg0: i32) -> (i32, i32) {
    %c0_i32 = arith.constant 0 : i32
    %c0_i32_0 = arith.constant 0 : i32
    %c0_i32_1 = arith.constant 0 : i32
    return %c0_i32, %c0_i32_0 : i32, i32
  }
  func.func @transform_4(%arg0: i32) -> (i32, i32) {
    %c0_i32 = arith.constant 0 : i32
    %c0_i32_0 = arith.constant 0 : i32
    %c0_i32_1 = arith.constant 0 : i32
    return %c0_i32, %c0_i32_0 : i32, i32
  }
  func.func @transform_5(%arg0: i32) -> (i32, i32) {
    %c0_i32 = arith.constant 0 : i32
    %c0_i32_0 = arith.constant 0 : i32
    %c0_i32_1 = arith.constant 0 : i32
    return %c0_i32, %c0_i32_0 : i32, i32
  }
  func.func @transform_6(%arg0: i32) -> (i32, i32) {
    %c0_i32 = arith.constant 0 : i32
    %c0_i32_0 = arith.constant 0 : i32
    %c0_i32_1 = arith.constant 0 : i32
    return %c0_i32, %c0_i32_0 : i32, i32
  }
  func.func @transform_7(%arg0: i32) -> (i32, i32) {
    %c0_i32 = arith.constant 0 : i32
    %c0_i32_0 = arith.constant 0 : i32
    %c0_i32_1 = arith.constant 0 : i32
    return %c0_i32, %c0_i32_0 : i32, i32
  }
  func.func @transform_8(%arg0: i32) -> (i32, i32) {
    %c0_i32 = arith.constant 0 : i32
    %c0_i32_0 = arith.constant 0 : i32
    %c0_i32_1 = arith.constant 0 : i32
    return %c0_i32, %c0_i32_0 : i32, i32
  }
  func.func @transform_9(%arg0: i32) -> (i32, i32) {
    %c0_i32 = arith.constant 0 : i32
    %c0_i32_0 = arith.constant 0 : i32
    %c0_i32_1 = arith.constant 0 : i32
    return %c0_i32, %c0_i32_0 : i32, i32
  }
  func.func @transform_10(%arg0: i32) -> (i32, i32) {
    %c0_i32 = arith.constant 0 : i32
    %c0_i32_0 = arith.constant 0 : i32
    %c0_i32_1 = arith.constant 0 : i32
    return %c0_i32, %c0_i32_0 : i32, i32
  }
  func.func @transform_11(%arg0: i32) -> (i32, i32) {
    %c0_i32 = arith.constant 0 : i32
    %c0_i32_0 = arith.constant 0 : i32
    %c0_i32_1 = arith.constant 0 : i32
    return %c0_i32, %c0_i32_0 : i32, i32
  }
  func.func @transform_12(%arg0: i32) -> (i32, i32) {
    %c0_i32 = arith.constant 0 : i32
    %c0_i32_0 = arith.constant 0 : i32
    %c0_i32_1 = arith.constant 0 : i32
    return %c0_i32, %c0_i32_0 : i32, i32
  }
  func.func @transform_13(%arg0: i32) -> (i32, i32) {
    %c0_i32 = arith.constant 0 : i32
    %c0_i32_0 = arith.constant 0 : i32
    return %arg0, %c0_i32 : i32, i32
  }
}

</mosaic_0001>

<bundles_post_ra>
// kernel: _autoencoder_forward_impl.1
= control target key start
LH: loop header
LB: loop body
LE: loop exit
PB: predicated region body
PF: predicated region fallthrough
CT: control target
= control target key end

     0   :  { %v2135_v43 = vmov 0.0   ;;  %vm2136_vm0 = vmmov 0   ;;  %vm466_vm1 = vcmask 130048   ;;  %vm791_vm2 = vcmask 523264   ;;  %s2723_s1 = inlined_call_operand.vmem [shape: bf16[784,128], index: 1, kind: input, shape index: {}]   ;;  %s2724_s0 = inlined_call_operand.vmem [shape: f32[16,784], index: 0, kind: input, shape index: {}]   ;;  %s2725_s3 = inlined_call_operand.vmem [shape: bf16[128,64], index: 3, kind: input, shape index: {}]   ;;  %s2726_s5 = inlined_call_operand.vmem [shape: bf16[64,32], index: 5, kind: input, shape index: {}]   ;;  %s2727_s2 = inlined_call_operand.vmem [shape: f32[1,128], index: 2, kind: input, shape index: {}]   ;;  %s2728_s7 = inlined_call_operand.vmem [shape: bf16[32,64], index: 7, kind: input, shape index: {}]   ;;  %s2729_s4 = inlined_call_operand.vmem [shape: f32[1,64], index: 4, kind: input, shape index: {}]   ;;  %s2730_s9 = inlined_call_operand.vmem [shape: bf16[64,128], index: 9, kind: input, shape index: {}]   ;;  %s2731_s6 = inlined_call_operand.vmem [shape: f32[1,32], index: 6, kind: input, shape index: {}]   ;;  %s2732_s11 = inlined_call_operand.vmem [shape: bf16[128,784], index: 11, kind: input, shape index: {}]   ;;  %s2733_s8 = inlined_call_operand.vmem [shape: f32[1,64], index: 8, kind: input, shape index: {}]   ;;  %s2734_s10 = inlined_call_operand.vmem [shape: f32[1,128], index: 10, kind: input, shape index: {}]   ;;  %s2735_s12 = inlined_call_operand.vmem [shape: f32[1,784], index: 12, kind: input, shape index: {}]   ;;  %s2736_s13 = inlined_call_operand.vmem [shape: f32[16,784], index: 13, kind: output, shape index: {}]  }
   0x1   :  { %v1960_v0 = vld [vmem:[%s2723_s1 + $0x40] sm:$0xff]   ;;  %v1964_v4 = vld [vmem:[%s2723_s1 + $0x48] sm:$0xff]   ;;  %v1968_v8 = vld [vmem:[%s2723_s1 + $0x50] sm:$0xff]   ;;  %vm860_vm3 = vcmask 261120  }
   0x2   :  { %v1961_v1 = vld [vmem:[%s2723_s1] sm:$0xff]   ;;  %1780 = vmatprep.subr.bf16.mxu0 %v1960_v0  ;;  %v1965_v5 = vld [vmem:[%s2723_s1 + $0x8] sm:$0xff]   ;;  %v1969_v9 = vld [vmem:[%s2723_s1 + $0x10] sm:$0xff]  }
   0x3   :  { %v1962_v2 = vld [vmem:[%s2723_s1 + $0xc0] sm:$0xff]   ;;  %1781 = vmatpush3.bf16.msra.mxu0 %v1961_v1  ;;  %v1966_v6 = vld [vmem:[%s2723_s1 + $0xc8] sm:$0xff]   ;;  %v1970_v10 = vld [vmem:[%s2723_s1 + $0xd0] sm:$0xff]  }
   0x4   :  { %v1963_v3 = vld [vmem:[%s2723_s1 + $0x80] sm:$0xff]   ;;  %1802 = vmatprep.subr.bf16.mxu1 %v1962_v2  ;;  %1782 = vmatprep.subr.bf16.mxu0 %v1964_v4  ;;  %v1967_v7 = vld [vmem:[%s2723_s1 + $0x88] sm:$0xff]   ;;  %v1971_v11 = vld [vmem:[%s2723_s1 + $0x90] sm:$0xff]  }
   0x5   :  { %1803 = vmatpush3.bf16.msra.mxu1 %v1963_v3  ;;  %v1972_v12 = vld [vmem:[%s2723_s1 + $0x58] sm:$0xff]   ;;  %v1976_v16 = vld [vmem:[%s2723_s1 + $0x60] sm:$0xff]   ;;  %v1980_v20 = vld [vmem:[%s2723_s1 + $0x68] sm:$0xff]  }
   0x6   :  { %1804 = vmatprep.subr.bf16.mxu1 %v1966_v6  ;;  %v1973_v13 = vld [vmem:[%s2723_s1 + $0x18] sm:$0xff]   ;;  %v1977_v17 = vld [vmem:[%s2723_s1 + $0x20] sm:$0xff]   ;;  %v1981_v21 = vld [vmem:[%s2723_s1 + $0x28] sm:$0xff]  }
   0x7   :  { %1783 = vmatpush3.bf16.msra.mxu0 %v1965_v5  ;;  %v1974_v14 = vld [vmem:[%s2723_s1 + $0xd8] sm:$0xff]   ;;  %v1978_v18 = vld [vmem:[%s2723_s1 + $0xe0] sm:$0xff]   ;;  %v1982_v22 = vld [vmem:[%s2723_s1 + $0xe8] sm:$0xff]  }
   0x8   :  { %1784 = vmatprep.subr.bf16.mxu0 %v1968_v8  ;;  %v1975_v15 = vld [vmem:[%s2723_s1 + $0x98] sm:$0xff]   ;;  %v1979_v19 = vld [vmem:[%s2723_s1 + $0xa0] sm:$0xff]   ;;  %v1983_v23 = vld [vmem:[%s2723_s1 + $0xa8] sm:$0xff]  }
   0x9   :  { %1805 = vmatpush3.bf16.msra.mxu1 %v1967_v7  ;;  %v1984_v24 = vld [vmem:[%s2723_s1 + $0x70] sm:$0xff]   ;;  %v1988_v28 = vld [vmem:[%s2723_s1 + $0x78] sm:$0xff]   ;;  %v47_v31 = vld [vmem:[%s2724_s0 + $0x8] sm:$0xff] }
   0xa   :  { %1806 = vmatprep.subr.bf16.mxu1 %v1970_v10  ;;  %v1985_v25 = vld [vmem:[%s2723_s1 + $0x30] sm:$0xff]   ;;  %v1989_v29 = vld [vmem:[%s2723_s1 + $0x38] sm:$0xff]   ;;  %v54_v32 = vld [vmem:[%s2724_s0 + $0x40] sm:$0xff] }
   0xb   :  { %1785 = vmatpush3.bf16.msra.mxu0 %v1969_v9  ;;  %v1986_v26 = vld [vmem:[%s2723_s1 + $0xf0] sm:$0xff]   ;;  %v1990_v30 = vld [vmem:[%s2723_s1 + $0xf8] sm:$0xff]   ;;  %v61_v33 = vpack.c.bf16 %v54_v32, %v47_v31  ;;  %v46_v35 = vld [vmem:[%s2724_s0] sm:$0xff] }
   0xc   :  { %1786 = vmatprep.subr.bf16.mxu0 %v1972_v12  ;;  %v1987_v27 = vld [vmem:[%s2723_s1 + $0xb0] sm:$0xff]   ;;  %v1991_v34 = vld [vmem:[%s2723_s1 + $0xb8] sm:$0xff]   ;;  %v1992_v38 = vld [vmem:[%s2723_s1 + $0x140] sm:$0xff]  }
   0xd   :  { %1807 = vmatpush3.bf16.msra.mxu1 %v1971_v11  ;;  %v53_v36 = vld [vmem:[%s2724_s0 + $0x38] sm:$0xff]  ;;  %502 = vmatprep.mubr.bf16.mxu0 %v61_v33  ;;  %v56_v40 = vld [vmem:[%s2724_s0 + $0x50] sm:$0xff]  ;;  %v1993_v42 = vld [vmem:[%s2723_s1 + $0x100] sm:$0xff]  }
   0xe   :  { %1808 = vmatprep.subr.bf16.mxu1 %v1974_v14  ;;  %v60_v37 = vpack.c.bf16 %v53_v36, %v46_v35  ;;  %v49_v39 = vld [vmem:[%s2724_s0 + $0x18] sm:$0xff]  ;;  %v48_v44 = vld [vmem:[%s2724_s0 + $0x10] sm:$0xff]  ;;  %v55_v45 = vld [vmem:[%s2724_s0 + $0x48] sm:$0xff] }
   0xf   :  { %1787 = vmatpush3.bf16.msra.mxu0 %v1973_v13  ;;  %v63_v41 = vpack.c.bf16 %v56_v40, %v49_v39  ;;  %v62_v46 = vpack.c.bf16 %v55_v45, %v48_v44  ;;  %v1994_v47 = vld [vmem:[%s2723_s1 + $0x148] sm:$0xff]   ;;  %v1996_v49 = vld [vmem:[%s2723_s1 + $0x150] sm:$0xff]   ;;  %v1998_v51 = vld [vmem:[%s2723_s1 + $0x158] sm:$0xff]  }
  0x10   :  { %1788 = vmatprep.subr.bf16.mxu0 %v1976_v16  ;;  %v1995_v48 = vld [vmem:[%s2723_s1 + $0x108] sm:$0xff]   ;;  %v1997_v50 = vld [vmem:[%s2723_s1 + $0x110] sm:$0xff]   ;;  %v1999_v52 = vld [vmem:[%s2723_s1 + $0x118] sm:$0xff]  }
  0x11   :  { %1809 = vmatpush3.bf16.msra.mxu1 %v1975_v15  ;;  %543 = vmatprep.mubr.bf16.mxu1 %v63_v41  ;;  %v2000_v53 = vld [vmem:[%s2723_s1 + $0x160] sm:$0xff]   ;;  %v2002_v55 = vld [vmem:[%s2723_s1 + $0x168] sm:$0xff]   ;;  %v52_v61 = vld [vmem:[%s2724_s0 + $0x30] sm:$0xff] }
  0x12   :  { %1810 = vmatprep.subr.bf16.mxu1 %v1978_v18  ;;  %v2001_v54 = vld [vmem:[%s2723_s1 + $0x120] sm:$0xff]   ;;  %v51_v57 = vld [vmem:[%s2724_s0 + $0x28] sm:$0xff]  ;;  %v2004_v63 = vld [vmem:[%s2723_s1 + $0x170] sm:$0xff]  }
  0x13   :  { %1789 = vmatpush3.bf16.msra.mxu0 %v1977_v17  ;;  %v2008_v56 = vld [vmem:[%s2723_s1 + $0x180] sm:$0xff]   ;;  %v2003_v59 = vld [vmem:[%s2723_s1 + $0x128] sm:$0xff]   ;;  %v2005_v1 = vld [vmem:[%s2723_s1 + $0x130] sm:$0xff]  }
  0x14   :  { %1790 = vmatprep.subr.bf16.mxu0 %v1980_v20  ;;  %v58_v58 = vld [vmem:[%s2724_s0 + $0x60] sm:$0xff]  ;;  %v59_v62 = vld [vmem:[%s2724_s0 + $0x68] sm:$0xff]  ;;  %v2006_v2 = vld [vmem:[%s2723_s1 + $0x178] sm:$0xff]  }
  0x15   :  { %1811 = vmatpush3.bf16.msra.mxu1 %v1979_v19  ;;  %v65_v60 = vpack.c.bf16 %v58_v58, %v51_v57  ;;  %v66_v0 = vpack.c.bf16 %v59_v62, %v52_v61  ;;  %v2007_v3 = vld [vmem:[%s2723_s1 + $0x138] sm:$0xff]   ;;  %v50_v4 = vld [vmem:[%s2724_s0 + $0x20] sm:$0xff]  ;;  %v2010_v8 = vld [vmem:[%s2725_s3 + $0x8] sm:$0xff]  }
  0x16   :  { %1812 = vmatprep.subr.bf16.mxu1 %v1982_v22  ;;  %v57_v5 = vld [vmem:[%s2724_s0 + $0x58] sm:$0xff]  ;;  %v2009_v7 = vld [vmem:[%s2725_s3] sm:$0xff]   ;;  %v2011_v9 = vld [vmem:[%s2725_s3 + $0x10] sm:$0xff]  }
  0x17   :  { %1791 = vmatpush3.bf16.msra.mxu0 %v1981_v21  ;;  %v64_v6 = vpack.c.bf16 %v57_v5, %v50_v4  ;;  %v2012_v10 = vld [vmem:[%s2725_s3 + $0x18] sm:$0xff]   ;;  %v2013_v11 = vld [vmem:[%s2725_s3 + $0x20] sm:$0xff]   ;;  %v2014_v12 = vld [vmem:[%s2725_s3 + $0x28] sm:$0xff]  }
  0x18   :  { %1792 = vmatprep.subr.bf16.mxu0 %v1984_v24  ;;  %v2015_v13 = vld [vmem:[%s2725_s3 + $0x30] sm:$0xff]   ;;  %v2016_v14 = vld [vmem:[%s2725_s3 + $0x38] sm:$0xff]   ;;  %v2017_v15 = vld [vmem:[%s2726_s5] sm:$0xff]  }
  0x19   :  { %1813 = vmatpush3.bf16.msra.mxu1 %v1983_v23  ;;  %v2018_v16 = vld [vmem:[%s2726_s5 + $0x8] sm:$0xff]   ;;  %v1641_v18 = vld [vmem:[%s2727_s2] ss:$0 sm:$0xff] }
  0x1a   :  { %1814 = vmatprep.subr.bf16.mxu1 %v1986_v26  ;;  %v1701_v4 = vld [vmem:[%s2731_s6] ss:$0 sm:$0xff] }
  0x1b   :  { %1793 = vmatpush3.bf16.msra.mxu0 %v1985_v25 }
  0x1c   :  { %1794 = vmatprep.subr.bf16.mxu0 %v1988_v28 }
  0x1d   :  { %1815 = vmatpush3.bf16.msra.mxu1 %v1987_v27 }
  0x1e   :  { %1816 = vmatprep.subr.bf16.mxu1 %v1990_v30 }
  0x1f   :  { %1795 = vmatpush3.bf16.msra.mxu0 %v1989_v29 }
  0x20   :  { %1824 = vmatprep.subr.bf16.mxu0 %v1992_v38 }
  0x21   :  { %1817 = vmatpush3.bf16.msra.mxu1 %v1991_v34 }
  0x22   :  { %1879 = vmatprep.subr.bf16.mxu1 %v2135_v43  ;;  %503 = vmatmul.mubr.bf16.vlgmr.msra.gmra.mrb[0].mxu0 %v60_v37 }
  0x23   :  { %1825 = vmatpush3.bf16.msra.mxu0 %v1993_v42  ;;  %584 = vmatprep.mubr.bf16.mxu0 %v65_v60 }
  0x24   :  { %544 = vmatmul.mubr.bf16.vlgmr.msra.gmra.mrb[0].mxu1 %v62_v46  ;;  %1826 = vmatprep.subr.bf16.mxu0 %v1994_v47 }
  0x25   :  { %1881 = vmatprep.mubr.msk.bf16.mxu1 %vm2136_vm0, %v2135_v43  ;;  %1880 = vmatpush3.bf16.msra.mxu1 %v2008_v56 }
  0x26   :  { %1885 = vmatprep.subr.bf16.mxu1 %v2135_v43 }
  0x27   :  { %1827 = vmatpush3.bf16.msra.mxu0 %v1995_v48 }
  0x28   :  { %1828 = vmatprep.subr.bf16.mxu0 %v1996_v49 }
  0x2b   :  { %1829 = vmatpush3.bf16.msra.mxu0 %v1997_v50 }
  0x2c   :  { %1830 = vmatprep.subr.bf16.mxu0 %v1998_v51  ;;  %1882 = vmatmul.mubr.msk.bf16.vlgmr.msra.gmra.mrb[4].mxu1 %vm466_vm1, %v66_v0 }
  0x2d   :  { %1901 = vmatprep.mubr.msk.bf16.mxu1 %vm2136_vm0, %v2135_v43  ;;  %1886 = vmatpush3.bf16.msra.mxu1 %v2009_v7 }
  0x2e   :  { %1887 = vmatprep.subr.bf16.mxu1 %v2135_v43 }
  0x2f   :  { %1831 = vmatpush3.bf16.msra.mxu0 %v1999_v52  ;;  %v2019_v52 = vld [vmem:[%s2726_s5 + $0x10] sm:$0xff]  }
  0x30   :  { %1832 = vmatprep.subr.bf16.mxu0 %v2000_v53  ;;  %v2020_v53 = vld [vmem:[%s2726_s5 + $0x18] sm:$0xff]  }
  0x31   :  { %1888 = vmatpush3.bf16.msra.mxu1 %v2010_v8 }
  0x32   :  { %1889 = vmatprep.subr.bf16.mxu1 %v2135_v43 }
  0x33   :  { %1833 = vmatpush3.bf16.msra.mxu0 %v2001_v54  ;;  %v2021_v54 = vld [vmem:[%s2728_s7] sm:$0xff]  }
  0x34   :  { %1834 = vmatprep.subr.bf16.mxu0 %v2002_v55  ;;  %v1692_v55 = vld [vmem:[%s2729_s4] ss:$0 sm:$0xff] }
  0x35   :  { %1890 = vmatpush3.bf16.msra.mxu1 %v2011_v9 }
  0x36   :  { %1891 = vmatprep.subr.bf16.mxu1 %v2135_v43 }
  0x37   :  { %1835 = vmatpush3.bf16.msra.mxu0 %v2003_v59 }
  0x38   :  { %1836 = vmatprep.subr.bf16.mxu0 %v2004_v63 }
  0x39   :  { %1892 = vmatpush3.bf16.msra.mxu1 %v2012_v10 }
  0x3a   :  { %1893 = vmatprep.subr.bf16.mxu1 %v2135_v43 }
  0x3b   :  { %1837 = vmatpush3.bf16.msra.mxu0 %v2005_v1  ;;  %v2022_v1 = vld [vmem:[%s2728_s7 + $0x8] sm:$0xff]  }
  0x3c   :  { %1838 = vmatprep.subr.bf16.mxu0 %v2006_v2  ;;  %v2023_v2 = vld [vmem:[%s2730_s9] sm:$0xff]  }
  0x3d   :  { %1894 = vmatpush3.bf16.msra.mxu1 %v2013_v11 }
  0x3e   :  { %1895 = vmatprep.subr.bf16.mxu1 %v2135_v43 }
  0x3f   :  { %1839 = vmatpush3.bf16.msra.mxu0 %v2007_v3  ;;  %v2024_v3 = vld [vmem:[%s2730_s9 + $0x8] sm:$0xff]  }
  0x40   :  { %1905 = vmatprep.subr.bf16.mxu0 %v2135_v43 }
  0x41   :  { %1896 = vmatpush3.bf16.msra.mxu1 %v2014_v12  ;;  %v2025_v12 = vld [vmem:[%s2730_s9 + $0x10] sm:$0xff]  }
  0x42   :  { %585 = vmatmul.mubr.bf16.vlgmr.msra.gmra.mrb[4].mxu0 %v64_v6  ;;  %1897 = vmatprep.subr.bf16.mxu1 %v2135_v43 }
  0x43   :  { %1913 = vmatprep.mubr.msk.bf16.mxu0 %vm2136_vm0, %v2135_v43  ;;  %1906 = vmatpush3.bf16.msra.mxu0 %v2017_v15  ;;  %v2029_v15 = vld [vmem:[%s2732_s11 + $0x4] ss:$28 sps:$4 sm:$0xff]  }
  0x44   :  { %1907 = vmatprep.subr.bf16.mxu0 %v2135_v43 }
  0x45   :  { %1898 = vmatpush3.bf16.msra.mxu1 %v2015_v13  ;;  %v2026_v13 = vld [vmem:[%s2730_s9 + $0x18] sm:$0xff]  }
  0x46   :  { %1899 = vmatprep.subr.bf16.mxu1 %v2135_v43 }
  0x47   :  { %1908 = vmatpush3.bf16.msra.mxu0 %v2018_v16  ;;  %v2032_v16 = vld [vmem:[%s2732_s11 + $0xc] ss:$28 sps:$4 sm:$0xff]  }
  0x48   :  { %1909 = vmatprep.subr.bf16.mxu0 %v2135_v43 }
  0x49   :  { %1900 = vmatpush3.bf16.msra.mxu1 %v2016_v14  ;;  %v2027_v14 = vld [vmem:[%s2732_s11] ss:$28 sps:$4 sm:$0xff]  }
  0x4a   :  { %1917 = vmatprep.subr.bf16.mxu1 %v2135_v43 }
  0x4b   :  { %1910 = vmatpush3.bf16.msra.mxu0 %v2019_v52  ;;  %v2066_v52 = vld [vmem:[%s2732_s11 + $0x158] ss:$28 sps:$4 sm:$0xff]  }
  0x4c   :  { %1911 = vmatprep.subr.bf16.mxu0 %v2135_v43 }
  0x4f   :  { %1912 = vmatpush3.bf16.msra.mxu0 %v2020_v53  ;;  %v2071_v53 = vld [vmem:[%s2732_s11 + $0x18c] ss:$28 sps:$4 sm:$0xff]  }
  0x50   :  { %1925 = vmatprep.subr.bf16.mxu0 %v2135_v43 }
  0xf5   :  { %v1796_v17 = vpop.f32.mrb[0].mxu0 }
  0xf6   :  { %v1797_v19 = vpop.f32.mrb[1].mxu0 }
  0xf7   :  { %v1798_v20 = vadd.f32 %v1797_v19, %v1796_v17  ;;  %v1799_v21 = vpop.f32.mrb[2].mxu0  ;;  %v1818_v22 = vpop.f32.mrb[0].mxu1  ;;  %v2035_v17 = vld [vmem:[%s2732_s11 + $0x3c] ss:$28 sps:$4 sm:$0xff]   ;;  %v2041_v19 = vld [vmem:[%s2732_s11 + $0x74] ss:$28 sps:$4 sm:$0xff]  }
  0xf8   :  { %v1800_v23 = vpop.f32.mrb[3].mxu0  ;;  %v1819_v26 = vpop.f32.mrb[1].mxu1 }
  0xf9   :  { %v505_v24 = vadd.f32 %v1798_v20, %v1641_v18  ;;  %v1801_v25 = vadd.f32 %v1800_v23, %v1799_v21  ;;  %v1820_v27 = vadd.f32 %v1819_v26, %v1818_v22  ;;  %v1821_v28 = vpop.f32.mrb[2].mxu1  ;;  %v2039_v20 = vld [vmem:[%s2732_s11 + $0x70] ss:$28 sps:$4 sm:$0xff]   ;;  %v2045_v22 = vld [vmem:[%s2732_s11 + $0xa8] ss:$28 sps:$4 sm:$0xff]  }
  0xfa   :  { %v1822_v30 = vpop.f32.mrb[3].mxu1  ;;  %v2047_v21 = vld [vmem:[%s2732_s11 + $0xac] ss:$28 sps:$4 sm:$0xff]   ;;  %v2053_v23 = vld [vmem:[%s2732_s11 + $0xe4] ss:$28 sps:$4 sm:$0xff]  }
  0xfb   :  { %v508_v29 = vadd.f32 %v1801_v25, %v1641_v18  ;;  %v546_v31 = vadd.f32 %v1820_v27, %v505_v24  ;;  %v1823_v32 = vadd.f32 %v1822_v30, %v1821_v28  ;;  %v2033_v18 = vld [vmem:[%s2732_s11 + $0x38] ss:$28 sps:$4 sm:$0xff]   ;;  %v2051_v24 = vld [vmem:[%s2732_s11 + $0xe0] ss:$28 sps:$4 sm:$0xff]  }
  0xfc   :  { %v2059_v25 = vld [vmem:[%s2732_s11 + $0x11c] ss:$28 sps:$4 sm:$0xff]   ;;  %v1707_v27 = vld [vmem:[%s2733_s8] ss:$0 sm:$0xff] }
  0xfd   :  { %v549_v33 = vadd.f32 %v1823_v32, %v508_v29  ;;  %v2057_v26 = vld [vmem:[%s2732_s11 + $0x118] ss:$28 sps:$4 sm:$0xff]  }
  0xff   :  { %v627_v34 = vpop.f32.mrb[4].mxu1 }
 0x100   :  { %v1883_v35 = vpop.f32.mrb[5].mxu1 }
 0x101   :  { %v630_v36 = vpop.f32.mrb[6].mxu1 }
 0x102   :  { %v1884_v37 = vpop.f32.mrb[7].mxu1 }
 0x115   :  { %v1840_v38 = vpop.f32.mrb[4].mxu0 }
 0x116   :  { %v1841_v39 = vpop.f32.mrb[5].mxu0 }
 0x117   :  { %v1842_v40 = vadd.f32 %v1841_v39, %v1840_v38  ;;  %v1843_v41 = vpop.f32.mrb[6].mxu0  ;;  %v2038_v38 = vld [vmem:[%s2732_s11 + $0x44] ss:$28 sps:$4 sm:$0xff]  }
 0x118   :  { %v1844_v42 = vpop.f32.mrb[7].mxu0  ;;  %v2036_v39 = vld [vmem:[%s2732_s11 + $0x40] ss:$28 sps:$4 sm:$0xff]  }
 0x119   :  { %v587_v44 = vadd.f32 %v1842_v40, %v546_v31  ;;  %v1845_v45 = vadd.f32 %v1844_v42, %v1843_v41  ;;  %v2044_v40 = vld [vmem:[%s2732_s11 + $0x7c] ss:$28 sps:$4 sm:$0xff]   ;;  %v2050_v42 = vld [vmem:[%s2732_s11 + $0xb4] ss:$28 sps:$4 sm:$0xff]  }
 0x11a   :  { %v2042_v41 = vld [vmem:[%s2732_s11 + $0x78] ss:$28 sps:$4 sm:$0xff]  }
 0x11b   :  { %v628_v46 = vadd.f32 %v627_v34, %v587_v44  ;;  %v590_v47 = vadd.f32 %v1845_v45, %v549_v33  ;;  %v2048_v44 = vld [vmem:[%s2732_s11 + $0xb0] ss:$28 sps:$4 sm:$0xff]  }
 0x11c   :  { %v2056_v45 = vld [vmem:[%s2732_s11 + $0xec] ss:$28 sps:$4 sm:$0xff]  }
 0x11d   :  { %v631_v48 = vadd.f32 %v630_v36, %v590_v47  ;;  %v634_v49 = vmax.f32 %v628_v46, 0.0  ;;  %v2030_v36 = vld [vmem:[%s2732_s11 + $0x8] ss:$28 sps:$4 sm:$0xff]  }
 0x11e   :  { %v2054_v46 = vld [vmem:[%s2732_s11 + $0xe8] ss:$28 sps:$4 sm:$0xff]  }
 0x11f   :  { %v635_v50 = vmax.f32 %v631_v48, 0.0  ;;  %v2062_v47 = vld [vmem:[%s2732_s11 + $0x124] ss:$28 sps:$4 sm:$0xff]  }
 0x120   :  { %v2060_v48 = vld [vmem:[%s2732_s11 + $0x120] ss:$28 sps:$4 sm:$0xff]  }
 0x121   :  { %v636_v51 = vpack.c.bf16 %v635_v50, %v634_v49  ;;  %v2065_v49 = vld [vmem:[%s2732_s11 + $0x154] ss:$28 sps:$4 sm:$0xff]   ;;  %v2068_v50 = vld [vmem:[%s2732_s11 + $0x15c] ss:$28 sps:$4 sm:$0xff]  }
 0x123   :  { %1902 = vmatmul.mubr.bf16.vlgmr.msra.gmra.mrb[8].mxu1 %v636_v51  ;;  %v2063_v51 = vld [vmem:[%s2732_s11 + $0x150] ss:$28 sps:$4 sm:$0xff]  }
 0x124   :  { %1921 = vmatprep.mubr.msk.bf16.mxu1 %vm2136_vm0, %v2135_v43  ;;  %1918 = vmatpush3.bf16.msra.mxu1 %v2021_v54  ;;  %v2074_v54 = vld [vmem:[%s2732_s11 + $0x194] ss:$28 sps:$4 sm:$0xff]  }
 0x125   :  { %1919 = vmatprep.subr.bf16.mxu1 %v2135_v43 }
 0x128   :  { %1920 = vmatpush3.bf16.msra.mxu1 %v2022_v1 }
 0x129   :  { %1383 = vmatprep.subr.bf16.mxu1 %v2029_v15  ;;  %v2090_v15 = vld [vmem:[%s2732_s11 + $0xc0] ss:$28 sps:$4 sm:$0xff]  }
 0x1f6   :  { %v742_v56 = vpop.f32.mrb[8].mxu1 }
 0x1f7   :  { %v743_v57 = vadd.f32 %v1692_v55, %v742_v56  ;;  %v1903_v58 = vpop.f32.mrb[9].mxu1  ;;  %v2072_v56 = vld [vmem:[%s2732_s11 + $0x190] ss:$28 sps:$4 sm:$0xff]  }
 0x1f8   :  { %v745_v59 = vpop.f32.mrb[10].mxu1  ;;  %v2137_v58 = vmov 0  }
 0x1f9   :  { %v746_v60 = vadd.f32 %v1692_v55, %v745_v59  ;;  %v1904_v61 = vpop.f32.mrb[11].mxu1  ;;  %v749_v62 = vmax.f32 %v743_v57, 0.0  ;;  %v2069_v55 = vld [vmem:[%s2732_s11 + $0x188] ss:$28 sps:$4 sm:$0xff]   ;;  %v2077_v57 = vld [vmem:[%s2732_s11 + $0x14] ss:$28 sps:$4 sm:$0xff]  }
 0x1fa   :  { %v1711_v59 = vld [vmem:[%s2734_s10] ss:$0 sm:$0xff] }
 0x1fb   :  { %v750_v63 = vmax.f32 %v746_v60, 0.0 }
 0x1fd   :  { %v751_v0 = vpack.c.bf16 %v750_v63, %v749_v62 }
 0x1ff   :  { %1914 = vmatmul.mubr.msk.bf16.vlgmr.msra.gmra.mrb[8].mxu0 %vm791_vm2, %v751_v0 }
 0x200   :  { %1933 = vmatprep.mubr.msk.bf16.mxu0 %vm2136_vm0, %v2135_v43  ;;  %1926 = vmatpush3.bf16.msra.mxu0 %v2023_v2 }
 0x201   :  { %1927 = vmatprep.subr.bf16.mxu0 %v2135_v43 }
 0x204   :  { %1928 = vmatpush3.bf16.msra.mxu0 %v2024_v3 }
 0x205   :  { %1929 = vmatprep.subr.bf16.mxu0 %v2135_v43 }
 0x208   :  { %1930 = vmatpush3.bf16.msra.mxu0 %v2025_v12  ;;  %v2086_v12 = vld [vmem:[%s2732_s11 + $0x88] ss:$28 sps:$4 sm:$0xff]  }
 0x209   :  { %1931 = vmatprep.subr.bf16.mxu0 %v2135_v43 }
 0x20c   :  { %1932 = vmatpush3.bf16.msra.mxu0 %v2026_v13  ;;  %v2089_v13 = vld [vmem:[%s2732_s11 + $0xbc] ss:$28 sps:$4 sm:$0xff]  }
 0x20d   :  { %1426 = vmatprep.subr.bf16.mxu0 %v2032_v16  ;;  %v2093_v16 = vld [vmem:[%s2732_s11 + $0xf4] ss:$28 sps:$4 sm:$0xff]  }
 0x2d2   :  { %v829_v5 = vpop.f32.mrb[8].mxu0 }
 0x2d3   :  { %v1915_v6 = vpop.f32.mrb[9].mxu0  ;;  %v830_v8 = vadd.f32 %v1701_v4, %v829_v5  ;;  %v2078_v5 = vld [vmem:[%s2732_s11 + $0x18] ss:$28 sps:$4 sm:$0xff]  }
 0x2d4   :  { %v832_v7 = vpop.f32.mrb[10].mxu0 }
 0x2d5   :  { %v833_v9 = vadd.f32 %v1701_v4, %v832_v7  ;;  %v1916_v10 = vpop.f32.mrb[11].mxu0  ;;  %v2075_v4 = vld [vmem:[%s2732_s11 + $0x10] ss:$28 sps:$4 sm:$0xff]  }
 0x2d6   :  { %v2081_v7 = vld [vmem:[%s2732_s11 + $0x4c] ss:$28 sps:$4 sm:$0xff]   ;;  %v2085_v10 = vld [vmem:[%s2732_s11 + $0x84] ss:$28 sps:$4 sm:$0xff]  }
 0x2d7   :  { %v836_v11 = vpack.c.bf16 %v833_v9, %v830_v8  ;;  %v2079_v8 = vld [vmem:[%s2732_s11 + $0x48] ss:$28 sps:$4 sm:$0xff]   ;;  %v2082_v9 = vld [vmem:[%s2732_s11 + $0x50] ss:$28 sps:$4 sm:$0xff]  }
 0x2d9   :  { %1922 = vmatmul.mubr.msk.bf16.vlgmr.msra.gmra.mrb[12].mxu1 %vm860_vm3, %v836_v11  ;;  %v2083_v11 = vld [vmem:[%s2732_s11 + $0x80] ss:$28 sps:$4 sm:$0xff]  }
 0x2da   :  { %1384 = vmatpush1.bf16.msra.mxu1 %v2027_v14  ;;  %1415 = vmatprep.mubr.bf16.mxu1 %v2137_v58  ;;  %v2087_v14 = vld [vmem:[%s2732_s11 + $0xb8] ss:$28 sps:$4 sm:$0xff]  }
 0x2db   :  { %1385 = vmatprep.subr.bf16.mxu1 %v2035_v17  ;;  %v2091_v17 = vld [vmem:[%s2732_s11 + $0xf0] ss:$28 sps:$4 sm:$0xff]  }
 0x2de   :  { %1386 = vmatpush1.bf16.msra.mxu1 %v2033_v18  ;;  %v2094_v18 = vld [vmem:[%s2732_s11 + $0xf8] ss:$28 sps:$4 sm:$0xff]  }
 0x2df   :  { %1387 = vmatprep.subr.bf16.mxu1 %v2041_v19  ;;  %v2097_v19 = vld [vmem:[%s2732_s11 + $0x12c] ss:$28 sps:$4 sm:$0xff]  }
 0x2e2   :  { %1388 = vmatpush1.bf16.msra.mxu1 %v2039_v20  ;;  %v2095_v20 = vld [vmem:[%s2732_s11 + $0x128] ss:$28 sps:$4 sm:$0xff]  }
 0x2e3   :  { %1389 = vmatprep.subr.bf16.mxu1 %v2047_v21  ;;  %v2098_v21 = vld [vmem:[%s2732_s11 + $0x130] ss:$28 sps:$4 sm:$0xff]  }
 0x2e6   :  { %1390 = vmatpush1.bf16.msra.mxu1 %v2045_v22  ;;  %v2101_v22 = vld [vmem:[%s2732_s11 + $0x164] ss:$28 sps:$4 sm:$0xff]  }
 0x2e7   :  { %1391 = vmatprep.subr.bf16.mxu1 %v2053_v23  ;;  %v2099_v23 = vld [vmem:[%s2732_s11 + $0x160] ss:$28 sps:$4 sm:$0xff]  }
 0x2ea   :  { %1392 = vmatpush1.bf16.msra.mxu1 %v2051_v24  ;;  %v2102_v24 = vld [vmem:[%s2732_s11 + $0x168] ss:$28 sps:$4 sm:$0xff]  }
 0x2eb   :  { %1393 = vmatprep.subr.bf16.mxu1 %v2059_v25  ;;  %v2105_v25 = vld [vmem:[%s2732_s11 + $0x19c] ss:$28 sps:$4 sm:$0xff]  }
 0x2ee   :  { %1394 = vmatpush1.bf16.msra.mxu1 %v2057_v26  ;;  %v2103_v26 = vld [vmem:[%s2732_s11 + $0x198] ss:$28 sps:$4 sm:$0xff]  }
 0x2ef   :  { %1395 = vmatprep.subr.bf16.mxu1 %v2065_v49 }
 0x2f2   :  { %1396 = vmatpush1.bf16.msra.mxu1 %v2063_v51 }
 0x2f3   :  { %1397 = vmatprep.subr.bf16.mxu1 %v2071_v53 }
 0x2f6   :  { %1398 = vmatpush1.bf16.msra.mxu1 %v2069_v55 }
 0x2f7   :  { %1469 = vmatprep.subr.bf16.mxu1 %v2077_v57 }
 0x3ac   :  { %v898_v28 = vpop.f32.mrb[12].mxu1 }
 0x3ad   :  { %v899_v29 = vadd.f32 %v1707_v27, %v898_v28  ;;  %v1923_v30 = vpop.f32.mrb[13].mxu1  ;;  %v1060_v28 = vlaneseq }
 0x3ae   :  { %v901_v31 = vpop.f32.mrb[14].mxu1 }
 0x3af   :  { %v902_v32 = vadd.f32 %v1707_v27, %v901_v31  ;;  %v1924_v33 = vpop.f32.mrb[15].mxu1  ;;  %v905_v34 = vmax.f32 %v899_v29, 0.0  ;;  %v2106_v27 = vld [vmem:[%s2732_s11 + $0x1a0] ss:$28 sps:$4 sm:$0xff]   ;;  %v1061_v29 = vshrl.u32 %v1060_v28, 7 }
 0x3b1   :  { %v906_v35 = vmax.f32 %v902_v32, 0.0  ;;  %v1062_v30 = vsub.s32 0, %v1061_v29  ;;  %v1070_v31 = vsub.s32 2, %v1061_v29  ;;  %v1058_v32 = vld [vmem:[%s2735_s12] sm:$0x7f]  ;;  %v1066_v33 = vsub.s32 1, %v1061_v29 }
 0x3b3   :  { %v907_v37 = vpack.c.bf16 %v906_v35, %v905_v34  ;;  %v1074_v34 = vsub.s32 3, %v1061_v29  ;;  %v1063_v35 = vrot.slane %v1058_v32, %v1062_v30 }
 0x3b5   :  { %1934 = vmatmul.mubr.msk.bf16.vlgmr.msra.gmra.mrb[12].mxu0 %vm791_vm2, %v907_v37 }
 0x3b6   :  { %1427 = vmatpush1.bf16.msra.mxu0 %v2030_v36  ;;  %1458 = vmatprep.mubr.bf16.mxu0 %v2137_v58  ;;  %v1071_v36 = vrot.slane %v1058_v32, %v1070_v31 }
 0x3b7   :  { %1428 = vmatprep.subr.bf16.mxu0 %v2038_v38 }
 0x3ba   :  { %1429 = vmatpush1.bf16.msra.mxu0 %v2036_v39  ;;  %v1067_v39 = vrot.slane %v1058_v32, %v1066_v33 }
 0x3bb   :  { %1430 = vmatprep.subr.bf16.mxu0 %v2044_v40 }
 0x3be   :  { %1431 = vmatpush1.bf16.msra.mxu0 %v2042_v41 }
 0x3bf   :  { %1432 = vmatprep.subr.bf16.mxu0 %v2050_v42 }
 0x3c2   :  { %1433 = vmatpush1.bf16.msra.mxu0 %v2048_v44 }
 0x3c3   :  { %1434 = vmatprep.subr.bf16.mxu0 %v2056_v45 }
 0x3c6   :  { %1435 = vmatpush1.bf16.msra.mxu0 %v2054_v46 }
 0x3c7   :  { %1436 = vmatprep.subr.bf16.mxu0 %v2062_v47 }
 0x3ca   :  { %1437 = vmatpush1.bf16.msra.mxu0 %v2060_v48 }
 0x3cb   :  { %1438 = vmatprep.subr.bf16.mxu0 %v2068_v50 }
 0x3ce   :  { %1439 = vmatpush1.bf16.msra.mxu0 %v2066_v52 }
 0x3cf   :  { %1440 = vmatprep.subr.bf16.mxu0 %v2074_v54 }
 0x3d2   :  { %1441 = vmatpush1.bf16.msra.mxu0 %v2072_v56 }
 0x3d3   :  { %1937 = vmatprep.subr.bf16.mxu0 %v2135_v43 }
 0x488   :  { %v984_v60 = vpop.f32.mrb[12].mxu0 }
 0x489   :  { %v985_v61 = vadd.f32 %v1711_v59, %v984_v60  ;;  %v1935_v62 = vpop.f32.mrb[13].mxu0 }
 0x48a   :  { %v987_v63 = vpop.f32.mrb[14].mxu0 }
 0x48b   :  { %v988_v0 = vadd.f32 %v1711_v59, %v987_v63  ;;  %v1936_v1 = vpop.f32.mrb[15].mxu0  ;;  %v991_v2 = vmax.f32 %v985_v61, 0.0 }
 0x48d   :  { %v992_v3 = vmax.f32 %v988_v0, 0.0 }
 0x48f   :  { %v993_v6 = vpack.c.bf16 %v992_v3, %v991_v2 }
 0x491   :  { %1416 = vmatmul.mubr.bf16.vlgmr.msra.gmra.mrb[16].mxu1 %v993_v6  ;;  %1459 = vmatmul.mubr.bf16.vlgmr.msra.gmra.mrb[16].mxu0 %v993_v6 }
 0x492   :  { %1470 = vmatpush1.bf16.msra.mxu1 %v2075_v4  ;;  %1938 = vmatpush3.bf16.msra.mxu0 %v2078_v5 }
 0x493   :  { %1471 = vmatprep.subr.bf16.mxu1 %v2081_v7  ;;  %1939 = vmatprep.subr.bf16.mxu0 %v2135_v43  ;;  %v1078_v7 = vsub.s32 4, %v1061_v29 }
 0x494   :  { %1501 = vmatprep.mubr.bf16.mxu1 %v2137_v58  ;;  %1953 = vmatprep.mubr.msk.bf16.mxu0 %vm2136_vm0, %v2135_v43 }
 0x496   :  { %1472 = vmatpush1.bf16.msra.mxu1 %v2079_v8  ;;  %1940 = vmatpush3.bf16.msra.mxu0 %v2082_v9  ;;  %v1086_v8 = vsub.s32 6, %v1061_v29  ;;  %v1082_v9 = vsub.s32 5, %v1061_v29 }
 0x497   :  { %1473 = vmatprep.subr.bf16.mxu1 %v2085_v10  ;;  %1941 = vmatprep.subr.bf16.mxu0 %v2135_v43  ;;  %v1079_v10 = vrot.slane %v1058_v32, %v1078_v7 }
 0x49a   :  { %1474 = vmatpush1.bf16.msra.mxu1 %v2083_v11  ;;  %1942 = vmatpush3.bf16.msra.mxu0 %v2086_v12  ;;  %v1087_v12 = vrot.slane %v1058_v32, %v1086_v8 }
 0x49b   :  { %1475 = vmatprep.subr.bf16.mxu1 %v2089_v13  ;;  %1943 = vmatprep.subr.bf16.mxu0 %v2135_v43 }
 0x49e   :  { %1476 = vmatpush1.bf16.msra.mxu1 %v2087_v14  ;;  %1944 = vmatpush3.bf16.msra.mxu0 %v2090_v15  ;;  %v1083_v14 = vrot.slane %v1058_v32, %v1082_v9 }
 0x49f   :  { %1477 = vmatprep.subr.bf16.mxu1 %v2093_v16  ;;  %1945 = vmatprep.subr.bf16.mxu0 %v2135_v43 }
 0x4a2   :  { %1478 = vmatpush1.bf16.msra.mxu1 %v2091_v17  ;;  %1946 = vmatpush3.bf16.msra.mxu0 %v2094_v18 }
 0x4a3   :  { %1479 = vmatprep.subr.bf16.mxu1 %v2097_v19  ;;  %1947 = vmatprep.subr.bf16.mxu0 %v2135_v43 }
 0x4a6   :  { %1480 = vmatpush1.bf16.msra.mxu1 %v2095_v20  ;;  %1948 = vmatpush3.bf16.msra.mxu0 %v2098_v21 }
 0x4a7   :  { %1481 = vmatprep.subr.bf16.mxu1 %v2101_v22  ;;  %1949 = vmatprep.subr.bf16.mxu0 %v2135_v43 }
 0x4aa   :  { %1482 = vmatpush1.bf16.msra.mxu1 %v2099_v23  ;;  %1950 = vmatpush3.bf16.msra.mxu0 %v2102_v24 }
 0x4ab   :  { %1483 = vmatprep.subr.bf16.mxu1 %v2105_v25  ;;  %1951 = vmatprep.subr.bf16.mxu0 %v2135_v43  ;;  %v1075_v43 = vrot.slane %v1058_v32, %v1074_v34 }
 0x4ae   :  { %1484 = vmatpush1.bf16.msra.mxu1 %v2103_v26  ;;  %1952 = vmatpush3.bf16.msra.mxu0 %v2106_v27 }
 0x4b1   :  { %1502 = vmatmul.mubr.bf16.vlgmr.msra.gmra.mrb[20].mxu1 %v993_v6  ;;  %1954 = vmatmul.mubr.bf16.vlgmr.msra.gmra.mrb[20].mxu0 %v993_v6 }
 0x564   :  { %v1417_v37 = vpop.f32.mrb[16].mxu1  ;;  %v1460_v38 = vpop.f32.mrb[16].mxu0 }
 0x565   :  { %v1419_v40 = vpop.f32.mrb[17].mxu1  ;;  %v1462_v41 = vpop.f32.mrb[17].mxu0  ;;  %v1418_v45 = vadd.f32 %v1417_v37, %v1063_v35  ;;  %v1461_v46 = vadd.f32 %v1460_v38, %v1071_v36 }
 0x566   :  { %v1421_v42 = vpop.f32.mrb[18].mxu1  ;;  %v1464_v44 = vpop.f32.mrb[18].mxu0  ;;  %v1420_v51 = vadd.f32 %v1419_v40, %v1067_v39  ;;  %v1463_v52 = vadd.f32 %v1462_v41, %v1075_v43 }
 0x567   :  { %v1422_v47 = vadd.f32 %v1421_v42, %v1063_v35  ;;  %v1465_v48 = vadd.f32 %v1464_v44, %v1071_v36  ;;  %v1423_v49 = vpop.f32.mrb[19].mxu1  ;;  %v1466_v50 = vpop.f32.mrb[19].mxu0 }
 0x568   :  { %v1424_v53 = vadd.f32 %v1423_v49, %v1067_v39  ;;  %v1467_v54 = vadd.f32 %v1466_v50, %v1075_v43 }
 0x569   :  { %v1553_v55 = vpack.c.bf16 %v1422_v47, %v1418_v45  ;;  %v1555_v56 = vpack.c.bf16 %v1465_v48, %v1461_v46 }
 0x56a   :  { %v1554_v57 = vpack.c.bf16 %v1424_v53, %v1420_v51  ;;  %v1556_v58 = vpack.c.bf16 %v1467_v54, %v1463_v52 }
 0x56b   :  { %v1773_v59 = vmul.bf16 3216621497, %v1553_v55  ;;  %v1775_v60 = vmul.bf16 3216621497, %v1555_v56 }
 0x56c   :  { %v1774_v61 = vmul.bf16 3216621497, %v1554_v57  ;;  %v1776_v62 = vmul.bf16 3216621497, %v1556_v58 }
 0x56d   :  { %2107 = vpow.bf16 %v1773_v59 }
 0x56e   :  { %2109 = vpow.bf16 %v1775_v60 }
 0x56f   :  { %2111 = vpow.bf16 %v1774_v61 }
 0x570   :  { %2113 = vpow.bf16 %v1776_v62 }
 0x578   :  { %v2108_v63 = vpop.eup %2107 }
 0x579   :  { %v2110_v0 = vpop.eup %2109  ;;  %v1588_v1 = vadd.bf16 1065369472, %v2108_v63 }
 0x57a   :  { %v2112_v2 = vpop.eup %2111  ;;  %v1590_v3 = vadd.bf16 1065369472, %v2110_v0 }
 0x57b   :  { %v2114_v4 = vpop.eup %2113  ;;  %2115 = vrcp.bf16 %v1588_v1  ;;  %v1589_v5 = vadd.bf16 1065369472, %v2112_v2 }
 0x57c   :  { %2117 = vrcp.bf16 %v1590_v3  ;;  %v1591_v6 = vadd.bf16 1065369472, %v2114_v4 }
 0x57d   :  { %2119 = vrcp.bf16 %v1589_v5 }
 0x57e   :  { %2121 = vrcp.bf16 %v1591_v6 }
 0x584   :  { %v1503_v11 = vpop.f32.mrb[20].mxu1  ;;  %v1546_v13 = vpop.f32.mrb[20].mxu0 }
 0x585   :  { %v1505_v15 = vpop.f32.mrb[21].mxu1  ;;  %v1955_v16 = vpop.f32.mrb[21].mxu0  ;;  %v1504_v22 = vadd.f32 %v1503_v11, %v1079_v10  ;;  %v1547_v29 = vadd.f32 %v1546_v13, %v1087_v12 }
 0x586   :  { %v2116_v17 = vpop.eup %2115  ;;  %v1507_v18 = vpop.f32.mrb[22].mxu1  ;;  %v1506_v30 = vadd.f32 %v1505_v15, %v1083_v14 }
 0x587   :  { %v1549_v19 = vpop.f32.mrb[22].mxu0  ;;  %v2118_v20 = vpop.eup %2117  ;;  %v1596_v21 = vmul.bf16 1065369472, %v2116_v17  ;;  %v1508_v23 = vadd.f32 %v1507_v18, %v1079_v10 }
 0x588   :  { %v1550_v24 = vadd.f32 %v1549_v19, %v1087_v12  ;;  %v1509_v25 = vpop.f32.mrb[23].mxu1  ;;  %v1956_v26 = vpop.f32.mrb[23].mxu0  ;;  %v1600_v28 = vmul.bf16 1065369472, %v2118_v20 }
 0x589   :  { %v2120_v27 = vpop.eup %2119  ;;  %v1510_v31 = vadd.f32 %v1509_v25, %v1083_v14  ;;  %v1609_v34 = vunpack.c.l.bf16 %v1596_v21  ;;  %v1616_v32 = vunpack.c.h.bf16 %v1596_v21  ;;  %v1557_v36 = vpack.c.bf16 %v1508_v23, %v1504_v22 }
 0x58a   :  { %v2122_v33 = vpop.eup %2121  ;;  %v1598_v35 = vmul.bf16 1065369472, %v2120_v27  ;;  %v1611_v37 = vunpack.c.l.bf16 %v1600_v28  ;;  %v1618_v38 = vunpack.c.h.bf16 %v1600_v28  ;;  %v1559_v43 = vpack.c.bf16 %v1550_v24, %v1547_v29 }
 0x58b   :  { %v1602_v39 = vmul.bf16 1065369472, %v2122_v33  ;;  %1623 = vst [vmem:[%s2736_s13] sm:$0xff] %v1609_v34  ;;  %1630 = vst [vmem:[%s2736_s13 + $0x38] sm:$0xff] %v1616_v32  ;;  %v1777_v42 = vmul.bf16 3216621497, %v1557_v36  ;;  %v1558_v44 = vpack.c.bf16 %v1510_v31, %v1506_v30 }
 0x58c   :  { %v1610_v40 = vunpack.c.l.bf16 %v1598_v35  ;;  %v1617_v41 = vunpack.c.h.bf16 %v1598_v35  ;;  %1625 = vst [vmem:[%s2736_s13 + $0x10] sm:$0xff] %v1611_v37  ;;  %1632 = vst [vmem:[%s2736_s13 + $0x48] sm:$0xff] %v1618_v38  ;;  %v1779_v47 = vmul.bf16 3216621497, %v1559_v43 }
 0x58d   :  { %v1612_v45 = vunpack.c.l.bf16 %v1602_v39  ;;  %v1619_v46 = vunpack.c.h.bf16 %v1602_v39  ;;  %2123 = vpow.bf16 %v1777_v42  ;;  %v1778_v48 = vmul.bf16 3216621497, %v1558_v44 }
 0x58e   :  { %1624 = vst [vmem:[%s2736_s13 + $0x8] sm:$0xff] %v1610_v40  ;;  %1631 = vst [vmem:[%s2736_s13 + $0x40] sm:$0xff] %v1617_v41  ;;  %2125 = vpow.bf16 %v1779_v47 }
 0x58f   :  { %1626 = vst [vmem:[%s2736_s13 + $0x18] sm:$0xff] %v1612_v45  ;;  %1633 = vst [vmem:[%s2736_s13 + $0x50] sm:$0xff] %v1619_v46  ;;  %2127 = vpow.bf16 %v1778_v48 }
 0x598   :  { %v2124_v49 = vpop.eup %2123 }
 0x599   :  { %v2126_v50 = vpop.eup %2125  ;;  %v1592_v51 = vadd.bf16 1065369472, %v2124_v49 }
 0x59a   :  { %v2128_v52 = vpop.eup %2127  ;;  %v1594_v53 = vadd.bf16 1065369472, %v2126_v50 }
 0x59b   :  { %2129 = vrcp.bf16 %v1592_v51  ;;  %v1593_v54 = vadd.bf16 1065369472, %v2128_v52 }
 0x59c   :  { %2131 = vrcp.bf16 %v1594_v53 }
 0x59d   :  { %2133 = vrcp.bf16 %v1593_v54 }
 0x5a6   :  { %v2130_v55 = vpop.eup %2129 }
 0x5a7   :  { %v2132_v56 = vpop.eup %2131  ;;  %v1604_v57 = vmul.bf16 1065369472, %v2130_v55 }
 0x5a8   :  { %v2134_v58 = vpop.eup %2133  ;;  %v1608_v59 = vmul.bf16 1065369472, %v2132_v56 }
 0x5a9   :  { %v1613_v60 = vunpack.c.l.bf16 %v1604_v57  ;;  %v1620_v61 = vunpack.c.h.bf16 %v1604_v57  ;;  %v1606_v62 = vmul.bf16 1065369472, %v2134_v58 }
 0x5aa   :  { %v1615_v63 = vunpack.c.l.bf16 %v1608_v59  ;;  %v1622_v0 = vunpack.c.h.bf16 %v1608_v59 }
 0x5ab   :  { %1627 = vst [vmem:[%s2736_s13 + $0x20] sm:$0xff] %v1613_v60  ;;  %1634 = vst [vmem:[%s2736_s13 + $0x58] sm:$0xff] %v1620_v61  ;;  %v1614_v1 = vunpack.c.l.bf16 %v1606_v62  ;;  %v1621_v2 = vunpack.c.h.bf16 %v1606_v62 }
 0x5ac   :  { %1629 = vst.msk [vmem:[%s2736_s13 + $0x30] sm:$0xff] %vm466_vm1, %v1615_v63  ;;  %1636 = vst.msk [vmem:[%s2736_s13 + $0x68] sm:$0xff] %vm466_vm1, %v1622_v0 }
 0x5ad   :  { %1628 = vst [vmem:[%s2736_s13 + $0x28] sm:$0xff] %v1614_v1  ;;  %1635 = vst [vmem:[%s2736_s13 + $0x60] sm:$0xff] %v1621_v2 }

</bundles_post_ra>
